<compile_context>
chip_gen: v5e
topology: v5e:2x2
jax: 0.10.0
libtpu: 0.0.40
codegen_flags: <defaults>
</compile_context>

<pallas_src>
import functools

import jax
import jax.numpy as jnp
from jax.experimental import pallas as pl
from jax.experimental.pallas import tpu as pltpu


def _vmem_limit_bytes():
    """Generation-aware scoped-VMEM limit (defaults are only 16/32 MiB)."""
    cap = None
    try:
        cap = getattr(pltpu.get_tpu_info(), "vmem_capacity_bytes", None)
    except Exception:
        cap = None
    if not cap:
        cap = 128 * 1024 * 1024
    # ~3/4 of physical VMEM: ~96 MiB on v5e/v6e (128 MiB), ~48 MiB on v7x (64 MiB).
    return int(min((cap * 3) // 4, 112 * 1024 * 1024))


def mhsa_kernel(x_ref, wq_ref, bq_ref, wkv_ref, bkv_ref, wp_ref, bp_ref,
                o_ref, kv_ref, *, num_heads: int, head_dim: int, tq: int):
    """One (batch, query-tile) step of multi-head self-attention.

    x_ref:   (1, N, C)  full-sequence x for this batch element (compute dtype)
    wq_ref:  (C, C)     q-projection weights, softmax scale pre-folded
    bq_ref:  (1, C)     q-projection bias, scale pre-folded (f32)
    wkv_ref: (C, 2C)    k|v projection weights
    bkv_ref: (1, 2C)    k|v projection bias (f32)
    wp_ref:  (C, C)     output projection weights
    bp_ref:  (1, C)     output projection bias (f32)
    o_ref:   (1, TQ, C) output tile
    kv_ref:  (N, 2C)    persistent VMEM scratch: projected K|V for this batch
    """
    C = num_heads * head_dim
    cd = wq_ref.dtype  # MXU operand dtype (bf16 recommended); accumulate in f32
    qi = pl.program_id(1)

    # K/V projected once per batch element (qi == 0), reused by every query
    # tile of this batch. f32 accumulation, stored in the compute dtype.
    @pl.when(qi == 0)
    def _():
        xf = x_ref[0]                                                   # (N, C)
        kv = jnp.dot(xf, wkv_ref[...],
                     preferred_element_type=jnp.float32) + bkv_ref[...]  # (N, 2C) f32
        kv_ref[...] = kv.astype(kv_ref.dtype)

    # Query tile sliced from the already-resident full-sequence block.
    start = pl.multiple_of(qi * tq, tq)
    xq = x_ref[0, pl.ds(start, tq), :]                                   # (TQ, C)

    # Q projection (scale already folded into wq/bq), f32 accumulation, then a
    # single cast to the compute dtype BEFORE the head-major relayout.
    q = jnp.dot(xq, wq_ref[...],
                preferred_element_type=jnp.float32) + bq_ref[...]        # (TQ, C) f32
    q = q.astype(cd)

    kv = kv_ref[...]                                                     # (N, 2C) compute dtype
    n = kv.shape[0]

    # Head-batched layout (H, seq, head_dim): one batched MXU sequence instead
    # of H narrow matmuls; kv is sliced only at the C-aligned k|v boundary.
    qh = jnp.swapaxes(q.reshape(tq, num_heads, head_dim), 0, 1)           # (H, TQ, hd)
    kh = jnp.swapaxes(kv[:, :C].reshape(n, num_heads, head_dim), 0, 1)    # (H, N, hd)
    vh = jnp.swapaxes(kv[:, C:].reshape(n, num_heads, head_dim), 0, 1)    # (H, N, hd)

    # Scaled scores (scale folded into q) and softmax statistics in f32.
    s = jnp.einsum("hqd,hkd->hqk", qh, kh,
                   preferred_element_type=jnp.float32)                    # (H, TQ, N)
    # TODO(synk): optional attention mask is None in this configuration, and
    # nn.Dropout is identity at inference time; neither is applied.
    m = jnp.max(s, axis=-1, keepdims=True)
    p = jnp.exp(s - m)
    l = jnp.sum(p, axis=-1, keepdims=True)                                # (H, TQ, 1)

    # Unnormalized p @ v, then deferred softmax normalization on the small
    # (H, TQ, hd) output (reciprocal goes to the EUP slot). Cast to the compute
    # dtype BEFORE the head-major relayout back to (TQ, C).
    o = jnp.einsum("hqk,hkd->hqd", p.astype(cd), vh,
                   preferred_element_type=jnp.float32)
    o = (o * pl.reciprocal(l, approx=True)).astype(cd)

    concat = jnp.swapaxes(o, 0, 1).reshape(tq, C)                         # (TQ, C)
    out = jnp.dot(concat, wp_ref[...],
                  preferred_element_type=jnp.float32) + bp_ref[...]
    o_ref[0] = out.astype(o_ref.dtype)


def multi_head_self_attention(x, w_qkv, b_qkv, w_proj, b_proj, *, num_heads,
                              compute_dtype=jnp.bfloat16, tq=None):
    """x: (B, N, C). Weights stored [in, out] (y = x @ W + b). Returns (B, N, C)."""
    B, N, C = x.shape
    head_dim = C // num_heads
    assert head_dim * num_heads == C
    scale = head_dim ** (-0.5)

    if tq is None:
        if N > 256 and N % 256 == 0:
            tq = 256          # fills the 256-wide MXU M dim on v6e/v7x
        elif N > 128 and N % 128 == 0:
            tq = 128
        else:
            tq = N            # TODO(synk): ragged N (e.g. ViT's 197) -> pad + masked tail.
    assert N % tq == 0, "sequence length must be divisible by the query tile"
    num_q_tiles = N // tq

    # Host-side prep: fold the softmax scale into the q columns, split the
    # fused qkv weight at the C-aligned q|kv boundary, cast weights AND the
    # activations to the MXU compute dtype (halves DMA bytes in bf16). Biases
    # stay f32 and are added after f32 accumulation.
    w_q = (w_qkv[:, :C] * scale).astype(compute_dtype)
    w_kv = w_qkv[:, C:].astype(compute_dtype)
    b_q = (b_qkv[:C] * scale).reshape(1, C).astype(jnp.float32)
    b_kv = b_qkv[C:].reshape(1, 2 * C).astype(jnp.float32)
    w_p = w_proj.astype(compute_dtype)
    b_p = b_proj.reshape(1, C).astype(jnp.float32)
    x_in = x.astype(compute_dtype)

    kernel = functools.partial(mhsa_kernel, num_heads=num_heads,
                               head_dim=head_dim, tq=tq)

    # Grid-invariant operands: single-buffered (the block index never changes,
    # so a second pipeline buffer is pure VMEM waste).
    inv = dict(pipeline_mode=pl.Buffered(1))

    return pl.pallas_call(
        kernel,
        out_shape=jax.ShapeDtypeStruct((B, N, C), x.dtype),
        grid_spec=pltpu.PrefetchScalarGridSpec(
            num_scalar_prefetch=0,
            grid=(B, num_q_tiles),
            in_specs=[
                pl.BlockSpec((1, N, C), lambda b, qi: (b, 0, 0)),        # x (full seq)
                pl.BlockSpec((C, C), lambda b, qi: (0, 0), **inv),       # w_q (pre-scaled)
                pl.BlockSpec((1, C), lambda b, qi: (0, 0), **inv),       # b_q (pre-scaled)
                pl.BlockSpec((C, 2 * C), lambda b, qi: (0, 0), **inv),   # w_kv
                pl.BlockSpec((1, 2 * C), lambda b, qi: (0, 0), **inv),   # b_kv
                pl.BlockSpec((C, C), lambda b, qi: (0, 0), **inv),       # w_proj
                pl.BlockSpec((1, C), lambda b, qi: (0, 0), **inv),       # b_proj
            ],
            out_specs=pl.BlockSpec((1, tq, C), lambda b, qi: (b, qi, 0)),
            scratch_shapes=[pltpu.VMEM((N, 2 * C), compute_dtype)],      # cached K|V
        ),
        compiler_params=pltpu.CompilerParams(
            # qi carries the per-batch K/V scratch -> must be "arbitrary";
            # batch stays "parallel" for megacore occupancy.
            dimension_semantics=("parallel", "arbitrary"),
            vmem_limit_bytes=_vmem_limit_bytes()),
    )(x_in, w_q, b_q, w_kv, b_kv, w_p, b_p)


def mhsa_reference(x, w_qkv, b_qkv, w_proj, b_proj, *, num_heads):
    """Pure-JAX f32 reference mirroring the PyTorch forward (eval mode)."""
    B, N, C = x.shape
    hd = C // num_heads
    qkv = x @ w_qkv + b_qkv                              # (B, N, 3C)
    qkv = qkv.reshape(B, N, 3, num_heads, hd)
    qkv = jnp.transpose(qkv, (2, 0, 3, 1, 4))            # (3, B, H, N, hd)
    q, k, v = qkv[0], qkv[1], qkv[2]
    attn = jnp.einsum("bhqd,bhkd->bhqk", q, k) * hd ** (-0.5)
    attn = jax.nn.softmax(attn, axis=-1)
    out = jnp.einsum("bhqk,bhkd->bhqd", attn, v)         # (B, H, N, hd)
    out = jnp.transpose(out, (0, 2, 1, 3)).reshape(B, N, C)
    return out @ w_proj + b_proj


if __name__ == "__main__":
    # Small config consistent with the module: embed_dim=32, num_heads=4.
    B, N, C = 2, 8, 32
    num_heads = 4

    key = jax.random.PRNGKey(0)
    kx, kwq, kbq, kwp, kbp = jax.random.split(key, 5)

    x = jax.random.normal(kx, (B, N, C), dtype=jnp.float32)
    # nn.Linear(embed_dim, 3*embed_dim, bias=True) and nn.Linear(embed_dim, embed_dim)
    w_qkv = jax.random.normal(kwq, (C, 3 * C), dtype=jnp.float32) * 0.05
    b_qkv = jax.random.normal(kbq, (3 * C,), dtype=jnp.float32) * 0.05
    w_proj = jax.random.normal(kwp, (C, C), dtype=jnp.float32) * 0.05
    b_proj = jax.random.normal(kbp, (C,), dtype=jnp.float32) * 0.05

    ref = mhsa_reference(x, w_qkv, b_qkv, w_proj, b_proj, num_heads=num_heads)

    # f32 matmul path (tight correctness check; only the approx reciprocal
    # loosens the tolerance vs. the exact softmax).
    out_f32 = multi_head_self_attention(x, w_qkv, b_qkv, w_proj, b_proj,
                                        num_heads=num_heads,
                                        compute_dtype=jnp.float32)
    out_f32 = jax.block_until_ready(out_f32)
    assert out_f32.shape == (B, N, C)
    assert jnp.allclose(out_f32, ref, atol=5e-3, rtol=5e-3), "f32 path mismatch"

    # Default bf16 MXU path (f32 accumulation, f32 softmax stats).
    out_bf16 = multi_head_self_attention(x, w_qkv, b_qkv, w_proj, b_proj,
                                         num_heads=num_heads)
    out_bf16 = jax.block_until_ready(out_bf16)
    assert out_bf16.shape == (B, N, C)
    assert jnp.allclose(out_bf16, ref, atol=3e-2, rtol=3e-2), "bf16 path mismatch"

    print("KERNEL_OK")
</pallas_src>

<mosaic_0001>
module attributes {stable_mosaic.version = 11 : i64} {
  func.func @mhsa_kernel(%arg0: i32, %arg1: i32, %arg2: memref<1x8x32xf32, #tpu.memory_space<vmem>>, %arg3: memref<32x32xf32, #tpu.memory_space<vmem>>, %arg4: memref<1x32xf32, #tpu.memory_space<vmem>>, %arg5: memref<32x64xf32, #tpu.memory_space<vmem>>, %arg6: memref<1x64xf32, #tpu.memory_space<vmem>>, %arg7: memref<32x32xf32, #tpu.memory_space<vmem>>, %arg8: memref<1x32xf32, #tpu.memory_space<vmem>>, %arg9: memref<1x8x32xf32, #tpu.memory_space<vmem>>, %arg10: memref<8x64xf32, #tpu.memory_space<vmem>>) attributes {dimension_semantics = [#tpu.dimension_semantics<parallel>, #tpu.dimension_semantics<arbitrary>], iteration_bounds = array<i64: 2, 1>, scalar_prefetch = 0 : i64, scratch_operands = 1 : i64, tpu.core_type = #tpu.core_type<tc>, window_params = [{transform_indices = @transform_0, window_bounds = array<i64: 1, 8, 32>}, {pipeline_mode = #tpu.pipeline_mode<synchronous>, transform_indices = @transform_1, window_bounds = array<i64: 32, 32>}, {pipeline_mode = #tpu.pipeline_mode<synchronous>, transform_indices = @transform_2, window_bounds = array<i64: 1, 32>}, {pipeline_mode = #tpu.pipeline_mode<synchronous>, transform_indices = @transform_3, window_bounds = array<i64: 32, 64>}, {pipeline_mode = #tpu.pipeline_mode<synchronous>, transform_indices = @transform_4, window_bounds = array<i64: 1, 64>}, {pipeline_mode = #tpu.pipeline_mode<synchronous>, transform_indices = @transform_5, window_bounds = array<i64: 32, 32>}, {pipeline_mode = #tpu.pipeline_mode<synchronous>, transform_indices = @transform_6, window_bounds = array<i64: 1, 32>}, {transform_indices = @transform_7, window_bounds = array<i64: 1, 8, 32>}]} {
    %c0_i32 = arith.constant 0 : i32
    %0 = arith.cmpi eq, %arg1, %c0_i32 : i32
    %1 = arith.extui %0 : i1 to i32
    %c0_i32_0 = arith.constant 0 : i32
    %2 = arith.cmpi ne, %1, %c0_i32_0 : i32
    scf.if %2 {
      %c0_20 = arith.constant 0 : index
      %c0_21 = arith.constant 0 : index
      %c0_22 = arith.constant 0 : index
      %44 = vector.load %arg2[%c0_20, %c0_21, %c0_22] : memref<1x8x32xf32, #tpu.memory_space<vmem>>, vector<1x8x32xf32>
      %45 = vector.shape_cast %44 : vector<1x8x32xf32> to vector<8x32xf32>
      %c0_23 = arith.constant 0 : index
      %c0_24 = arith.constant 0 : index
      %46 = vector.load %arg5[%c0_23, %c0_24] : memref<32x64xf32, #tpu.memory_space<vmem>>, vector<32x64xf32>
      %cst_25 = arith.constant dense<0.000000e+00> : vector<8x64xf32>
      %47 = tpu.matmul %45, %46, %cst_25 {dimension_numbers = #tpu.dot_dimension_numbers<[1], [0], [0], [1], [0, 0, 1, 1], [], []>} : vector<8x32xf32>, vector<32x64xf32>, vector<8x64xf32> -> vector<8x64xf32>
      %c0_26 = arith.constant 0 : index
      %c0_27 = arith.constant 0 : index
      %48 = vector.load %arg6[%c0_26, %c0_27] : memref<1x64xf32, #tpu.memory_space<vmem>>, vector<1x64xf32>
      %49 = vector.broadcast %48 : vector<1x64xf32> to vector<8x64xf32>
      %50 = arith.addf %47, %49 : vector<8x64xf32>
      %c0_28 = arith.constant 0 : index
      %c0_29 = arith.constant 0 : index
      %51 = vector.load %arg10[%c0_28, %c0_29] : memref<8x64xf32, #tpu.memory_space<vmem>>, vector<8x64xf32>
      tpu.vector_store %arg10[%c0_28, %c0_29], %50 {strides = array<i32>} : memref<8x64xf32, #tpu.memory_space<vmem>>, vector<8x64xf32>,
    } else {
    }
    %c8_i32 = arith.constant 8 : i32
    %3 = arith.muli %arg1, %c8_i32 : i32
    %4 = tpu.assume_multiple %3, 8 : i32
    %c0 = arith.constant 0 : index
    %5 = arith.index_cast %4 : i32 to index
    %c0_1 = arith.constant 0 : index
    %6 = vector.load %arg2[%c0, %5, %c0_1] : memref<1x8x32xf32, #tpu.memory_space<vmem>>, vector<1x8x32xf32>
    %7 = vector.shape_cast %6 : vector<1x8x32xf32> to vector<8x32xf32>
    %c0_2 = arith.constant 0 : index
    %c0_3 = arith.constant 0 : index
    %8 = vector.load %arg3[%c0_2, %c0_3] : memref<32x32xf32, #tpu.memory_space<vmem>>, vector<32x32xf32>
    %cst = arith.constant dense<0.000000e+00> : vector<8x32xf32>
    %9 = tpu.matmul %7, %8, %cst {dimension_numbers = #tpu.dot_dimension_numbers<[1], [0], [0], [1], [0, 0, 1, 1], [], []>} : vector<8x32xf32>, vector<32x32xf32>, vector<8x32xf32> -> vector<8x32xf32>
    %c0_4 = arith.constant 0 : index
    %c0_5 = arith.constant 0 : index
    %10 = vector.load %arg4[%c0_4, %c0_5] : memref<1x32xf32, #tpu.memory_space<vmem>>, vector<1x32xf32>
    %11 = vector.broadcast %10 : vector<1x32xf32> to vector<8x32xf32>
    %12 = arith.addf %9, %11 : vector<8x32xf32>
    %c0_6 = arith.constant 0 : index
    %c0_7 = arith.constant 0 : index
    %13 = vector.load %arg10[%c0_6, %c0_7] : memref<8x64xf32, #tpu.memory_space<vmem>>, vector<8x64xf32>
    %14 = vector.shape_cast %12 : vector<8x32xf32> to vector<8x4x8xf32>
    %15 = tpu.transpose %14, [1, 0, 2] : vector<8x4x8xf32> -> vector<4x8x8xf32>
    %16 = vector.extract_strided_slice %13 {offsets = [0, 0], sizes = [8, 32], strides = [1, 1]} : vector<8x64xf32> to vector<8x32xf32>
    %17 = vector.shape_cast %16 : vector<8x32xf32> to vector<8x4x8xf32>
    %18 = tpu.transpose %17, [1, 0, 2] : vector<8x4x8xf32> -> vector<4x8x8xf32>
    %19 = vector.extract_strided_slice %13 {offsets = [0, 32], sizes = [8, 32], strides = [1, 1]} : vector<8x64xf32> to vector<8x32xf32>
    %20 = vector.shape_cast %19 : vector<8x32xf32> to vector<8x4x8xf32>
    %21 = tpu.transpose %20, [1, 0, 2] : vector<8x4x8xf32> -> vector<4x8x8xf32>
    "tpu.trace_start"() <{level = 10 : i32, message = "hqd,hkd->hqk"}> : () -> ()
    %cst_8 = arith.constant dense<0.000000e+00> : vector<4x8x8xf32>
    %22 = tpu.matmul %15, %18, %cst_8 {dimension_numbers = #tpu.dot_dimension_numbers<[2], [2], [1], [1], [0, 0, 0, 1, 1, 1], [0], [0]>} : vector<4x8x8xf32>, vector<4x8x8xf32>, vector<4x8x8xf32> -> vector<4x8x8xf32>
    "tpu.trace_stop"() : () -> ()
    %cst_9 = arith.constant dense<0xFF800000> : vector<4x8xf32>
    %23 = vector.multi_reduction <maximumf>, %22, %cst_9 [2] : vector<4x8x8xf32> to vector<4x8xf32>
    %24 = vector.shape_cast %23 : vector<4x8xf32> to vector<4x8x1xf32>
    %25 = vector.broadcast %24 : vector<4x8x1xf32> to vector<4x8x8xf32>
    %26 = arith.subf %22, %25 : vector<4x8x8xf32>
    %27 = math.exp %26 : vector<4x8x8xf32>
    %cst_10 = arith.constant dense<0.000000e+00> : vector<4x8xf32>
    %28 = vector.multi_reduction <add>, %27, %cst_10 [2] : vector<4x8x8xf32> to vector<4x8xf32>
    %29 = vector.shape_cast %28 : vector<4x8xf32> to vector<4x8x1xf32>
    "tpu.trace_start"() <{level = 10 : i32, message = "hqk,hkd->hqd"}> : () -> ()
    %cst_11 = arith.constant dense<0.000000e+00> : vector<4x8x8xf32>
    %30 = tpu.matmul %27, %21, %cst_11 {dimension_numbers = #tpu.dot_dimension_numbers<[2], [1], [1], [2], [0, 0, 0, 1, 1, 2], [0], [0]>} : vector<4x8x8xf32>, vector<4x8x8xf32>, vector<4x8x8xf32> -> vector<4x8x8xf32>
    "tpu.trace_stop"() : () -> ()
    %31 = tpu.reciprocal %29 {approx = true} : vector<4x8x1xf32> -> vector<4x8x1xf32>
    %32 = vector.broadcast %31 : vector<4x8x1xf32> to vector<4x8x8xf32>
    %33 = arith.mulf %30, %32 : vector<4x8x8xf32>
    %34 = tpu.transpose %33, [1, 0, 2] : vector<4x8x8xf32> -> vector<8x4x8xf32>
    %35 = vector.shape_cast %34 : vector<8x4x8xf32> to vector<8x32xf32>
    %c0_12 = arith.constant 0 : index
    %c0_13 = arith.constant 0 : index
    %36 = vector.load %arg7[%c0_12, %c0_13] : memref<32x32xf32, #tpu.memory_space<vmem>>, vector<32x32xf32>
    %cst_14 = arith.constant dense<0.000000e+00> : vector<8x32xf32>
    %37 = tpu.matmul %35, %36, %cst_14 {dimension_numbers = #tpu.dot_dimension_numbers<[1], [0], [0], [1], [0, 0, 1, 1], [], []>} : vector<8x32xf32>, vector<32x32xf32>, vector<8x32xf32> -> vector<8x32xf32>
    %c0_15 = arith.constant 0 : index
    %c0_16 = arith.constant 0 : index
    %38 = vector.load %arg8[%c0_15, %c0_16] : memref<1x32xf32, #tpu.memory_space<vmem>>, vector<1x32xf32>
    %39 = vector.broadcast %38 : vector<1x32xf32> to vector<8x32xf32>
    %40 = arith.addf %37, %39 : vector<8x32xf32>
    %c0_17 = arith.constant 0 : index
    %c0_18 = arith.constant 0 : index
    %c0_19 = arith.constant 0 : index
    %41 = vector.load %arg9[%c0_17, %c0_18, %c0_19] : memref<1x8x32xf32, #tpu.memory_space<vmem>>, vector<1x8x32xf32>
    %42 = vector.shape_cast %41 : vector<1x8x32xf32> to vector<8x32xf32>
    %43 = vector.shape_cast %40 : vector<8x32xf32> to vector<1x8x32xf32>
    tpu.vector_store %arg9[%c0_17, %c0_18, %c0_19], %43 {strides = array<i32>} : memref<1x8x32xf32, #tpu.memory_space<vmem>>, vector<1x8x32xf32>,
    return
  }
  func.func @transform_0(%arg0: i32, %arg1: i32) -> (i32, i32, i32) {
    %c0_i32 = arith.constant 0 : i32
    %c0_i32_0 = arith.constant 0 : i32
    %c0_i32_1 = arith.constant 0 : i32
    return %arg0, %c0_i32, %c0_i32_0 : i32, i32, i32
  }
  func.func @transform_1(%arg0: i32, %arg1: i32) -> (i32, i32) {
    %c0_i32 = arith.constant 0 : i32
    %c0_i32_0 = arith.constant 0 : i32
    %c0_i32_1 = arith.constant 0 : i32
    return %c0_i32, %c0_i32_0 : i32, i32
  }
  func.func @transform_2(%arg0: i32, %arg1: i32) -> (i32, i32) {
    %c0_i32 = arith.constant 0 : i32
    %c0_i32_0 = arith.constant 0 : i32
    %c0_i32_1 = arith.constant 0 : i32
    return %c0_i32, %c0_i32_0 : i32, i32
  }
  func.func @transform_3(%arg0: i32, %arg1: i32) -> (i32, i32) {
    %c0_i32 = arith.constant 0 : i32
    %c0_i32_0 = arith.constant 0 : i32
    %c0_i32_1 = arith.constant 0 : i32
    return %c0_i32, %c0_i32_0 : i32, i32
  }
  func.func @transform_4(%arg0: i32, %arg1: i32) -> (i32, i32) {
    %c0_i32 = arith.constant 0 : i32
    %c0_i32_0 = arith.constant 0 : i32
    %c0_i32_1 = arith.constant 0 : i32
    return %c0_i32, %c0_i32_0 : i32, i32
  }
  func.func @transform_5(%arg0: i32, %arg1: i32) -> (i32, i32) {
    %c0_i32 = arith.constant 0 : i32
    %c0_i32_0 = arith.constant 0 : i32
    %c0_i32_1 = arith.constant 0 : i32
    return %c0_i32, %c0_i32_0 : i32, i32
  }
  func.func @transform_6(%arg0: i32, %arg1: i32) -> (i32, i32) {
    %c0_i32 = arith.constant 0 : i32
    %c0_i32_0 = arith.constant 0 : i32
    %c0_i32_1 = arith.constant 0 : i32
    return %c0_i32, %c0_i32_0 : i32, i32
  }
  func.func @transform_7(%arg0: i32, %arg1: i32) -> (i32, i32, i32) {
    %c0_i32 = arith.constant 0 : i32
    %c0_i32_0 = arith.constant 0 : i32
    return %arg0, %arg1, %c0_i32 : i32, i32, i32
  }
}

</mosaic_0001>

<bundles_post_ra>
// kernel: tpu_custom_call.1
= control target key start
LH: loop header
LB: loop body
LE: loop exit
PB: predicated region body
PF: predicated region fallthrough
CT: control target
= control target key end

     0   :  { %s2127_s0 = inlined_call_operand.hbm [shape: f32[2,8,32], index: 0, kind: input, shape index: {}]   ;;  %s2128_s1 = inlined_call_operand.hbm [shape: f32[32,32], index: 1, kind: input, shape index: {}]   ;;  %s2129_s2 = inlined_call_operand.vmem [shape: f32[1,32], index: 2, kind: input, shape index: {}]   ;;  %s2130_s3 = inlined_call_operand.hbm [shape: f32[32,64], index: 3, kind: input, shape index: {}]   ;;  %s2131_s4 = inlined_call_operand.vmem [shape: f32[1,64], index: 4, kind: input, shape index: {}]   ;;  %s2132_s5 = inlined_call_operand.hbm [shape: f32[32,32], index: 5, kind: input, shape index: {}]   ;;  %s2133_s6 = inlined_call_operand.vmem [shape: f32[1,32], index: 6, kind: input, shape index: {}]   ;;  %s2134_s7 = inlined_call_operand.hbm [shape: f32[2,8,32], index: 7, kind: output, shape index: {}]  }
   0x1   :  { %2135 = sst [smem:[#allocation16_spill]] %s2128_s1 }
   0x2   :  { %2136 = sst [smem:[#allocation17_spill]] %s2130_s3 }
   0x3   :  { %12 = vsyncpa [#allocation4], 0 }
   0x4   :  { %14 = vsyncpa [#allocation4 + $0x1], 0 }
   0x5   :  { %15 = vsyncpa [#allocation7], 0 }
   0x6   :  { %16 = vsyncpa [#allocation10], 0 }
   0x7   :  { %17 = vsyncpa [#allocation5], 0 }
   0x8   :  { %19 = vsyncpa [#allocation5 + $0x1], 0  ;;  %s1758_s24 = smov 0   ;;  %s1760_s25 = smov 0  }
   0x9   :  { %s1762_s26 = smov 0   ;;  %s1764_s27 = smov 0  }
   0xa   :  { %s1766_s28 = smov 0   ;;  %s1768_s29 = smov 0  }
   0xb LB: > { %s1325_s30 = sadd.s32 4294967295, %s1702_s29   ;;  %p1327_p0 = scmp.ge.s32.totalorder %s1702_s29, 1  ;;  %s1702_s29 = sphi %s1768_s29, %s25_s29   ;;  %s1698_s28 = sphi %s1766_s28, %s2150_s28   ;;  %s1694_s27 = sphi %s1764_s27, %s2149_s27   ;;  %s1690_s26 = sphi %s1762_s26, %s2148_s26   ;;  %s1686_s25 = sphi %s1760_s25, %s2147_s25   ;;  %s1682_s24 = sphi %s1758_s24, %s2146_s24  }
   0xc   : > { %p1792_p1 = scmp.eq.s32.totalorder %s1325_s30, 0  ;;  %p222_p2 = scmp.lt.s32.totalorder %s1702_s29, 3 }
   0xd   : > { %s2138_s1 = sld [smem:[#allocation16_spill]]  ;;  %s1704_s13 = smov [#allocation6]  }
   0xe   : > { %p1800_p3 = pnand %p1327_p0, %p222_p2  ;;  %s235_s14 = sshll.u32 %s1704_s13, 4  ;;  %s236_s14 = int_to_ptr.vmem [resolvable:$true] %s235_s14 }
   0xf   : > { %p1331_p6 = scmp.ge.s32.totalorder %s1702_s29, 2  ;;  %s2141_s3 = sld [smem:[#allocation17_spill]] }
  0x10   : > { %p1375_p4 = pneg %p1800_p3  ;;  %s1705_s19 = smov 128  }
  0x11   : > { %s1706_s20 = smov 8   ;;  %s1707_s21 = smov [#allocation8]  }
  0x12   : > { %p1808_p5 = pnand %p1375_p4, %p1792_p1  ;;  %s252_s22 = sshll.u32 %s1707_s21, 4  ;;  %s253_s22 = int_to_ptr.vmem [resolvable:$true] %s252_s22 }
  0x13   : > { %s233_s11 = sshll.u32 %s2138_s1, 4  ;;  %s267_s10 = sshll.u32 %s2132_s5, 4  ;;  %s234_s11 = int_to_ptr.hbm [resolvable:$true] %s233_s11  ;;  %s268_s10 = int_to_ptr.hbm [resolvable:$true] %s267_s10 }
  0x14   : > { %1378 = dma.hbm_to_vmem [thread:$0]  (!%p1808_p5), %s234_s11, 512, %s236_s14, [#allocation7], %s1705_s19, %s1705_s19, %s1706_s20  }
  0x15   : > { %s250_s18 = sshll.u32 %s2141_s3, 4  ;;  %s1708_s13 = smov [#allocation9]   ;;  %s251_s18 = int_to_ptr.hbm [resolvable:$true] %s250_s18 }
  0x16   : > { %1381 = dma.hbm_to_vmem [thread:$0]  (!%p1808_p5), %s251_s18, 512, %s253_s22, [#allocation7], %s1705_s19, %s1705_s19, %s1706_s20  }
  0x17   : > { %s269_s16 = sshll.u32 %s1708_s13, 4  ;;  %s1326_s11 = sadd.s32 4294967294, %s1702_s29   ;;  %s270_s16 = int_to_ptr.vmem [resolvable:$true] %s269_s16 }
  0x18   : > { %1384 = dma.hbm_to_vmem [thread:$0]  (!%p1808_p5), %s268_s10, 512, %s270_s16, [#allocation10], %s1705_s19, %s1705_s19, %s1706_s20  }
  0x19   : > { %s37_s14 = sadd.s32 1, %s1698_s28  ;;  %s44_s17 = sadd.s32 1, %s1690_s26 }
  0x1a   : > { %p39_p7 = scmp.ge.s32.totalorder %s37_s14, 2  ;;  %p51_p8 = scmp.ne.s32.totalorder %s1690_s26, %s1686_s25 }
  0x1b   : > { %p52_p9 = scmp.eq.s32.totalorder %s1702_s29, 0  ;;  %p57_p10 = scmp.ne.s32.totalorder %s1686_s25, %s1682_s24 }
  0x1c   : > { %s2152_s14 = smov (%p39_p7, %s37_s14), 0  ;;  %p209_p13 = scmp.eq.s32.totalorder %s1325_s30, 1 }
  0x1d   : > { %p1835_p11 = por %p52_p9, %p51_p8  ;;  %p1841_p12 = por %p1792_p1, %p57_p10 }
  0x1e   : > { %s41_s19 = ssub.s32 %s1698_s28, %s2152_s14  ;;  %p215_p2 = scmp.eq.s32.totalorder %s1326_s11, 1 }
  0x1f   : > { %p42_p0 = scmp.eq.s32.totalorder %s41_s19, 0  ;;  %p1849_p4 = por %p209_p13, %p51_p8 }
  0x20   : > { %p1396_p5 = scmp.lt.s32.totalorder %s1702_s29, 2  ;;  %p1857_p7 = por %p215_p2, %p57_p10 }
  0x21   : > { %s1855_s21 = scalar_select %p42_p0, %s1690_s26, %s44_s17  }
  0x22   : > { %s286_s23 = sand.u32 1, %s1690_s26   ;;  %s1333_s10 = sshll.u32 %s1698_s28, 3 }
  0x23   : > { %s1332_s9 = sshll.u32 %s286_s23, 3  ;;  %s294_s30 = scalar_lea.hbm %s2127_s0, %s1333_s10 }
  0x24   : > { %s290_s19 = scalar_lea.vmem [#allocation3], %s1332_s9  ;;  %s296_s1 = sshll.u32 %s294_s30, 4  ;;  %s297_s1 = int_to_ptr.hbm [resolvable:$true] %s296_s1 }
  0x25   : > { %s298_s11 = sshll.u32 %s290_s19, 4  ;;  %p1386_p8 = pnand %p1396_p5, %p1835_p11  ;;  %s299_s11 = int_to_ptr.vmem [resolvable:$true] %s298_s11 }
  0x26   : > { %s287_s17 = scalar_lea.sflag [#allocation4], %s286_s23  ;;  %307 = sbr.rel (%p1800_p3) target bundleno = 1022 (0x3fe), region = 48 }
  0x27   : > { %1388 = dma.hbm_to_vmem [thread:$0]  (!%p1386_p8), %s297_s1, 128, %s299_s11, %s287_s17  }
  0x28   : > { %s1871_s3 = sand.u32 (!%p1800_p3), 1, %s1686_s25  }
  0x29   : > { %s1335_s10 = sshll.u32 (!%p1800_p3), %s1871_s3, 3  ;;  %s310_s9 = scalar_lea.sflag (!%p1800_p3), [#allocation4], %s1871_s3 }
  0x2a   : > { %s313_s13 = scalar_lea.vmem (!%p1800_p3), [#allocation3], %s1335_s10 }
  0x2b   : > { %1665 = dma.done.wait (%p1841_p12), %s310_s9, 128  }
  0x2c   : > { %1667 = vsyncadd (%p1841_p12), %s310_s9, 4294967168 }
  0x2d   : > { %1669 = dma.done.wait (%p1792_p1), [#allocation7], 1024  }
  0x2e   : > { %1671 = vsyncadd (%p1792_p1), [#allocation7], 4294966272 }
  0x2f   : > { %1673 = dma.done.wait (%p1792_p1), [#allocation10], 512  }
  0x30   : > { %1675 = vsyncadd (%p1792_p1), [#allocation10], 4294966784  ;;  %v368_v0 = vld [vmem:[#allocation8 + $0x18] sm:$0xff]  ;;  %v367_v2 = vld [vmem:[#allocation8 + $0x10] sm:$0xff]  ;;  %vm373_vm0 = vcmask 261120   ;;  %vm397_vm1 = vcmask 523264  }
  0x31   : > { %v405_v1 = vld [vmem:[#allocation6 + $0x18] sm:$0xff]  ;;  %389 = vmatpush.msra.mxu0 %v368_v0  ;;  %v404_v3 = vld [vmem:[#allocation6 + $0x10] sm:$0xff]  ;;  %v366_v4 = vld [vmem:[#allocation8 + $0x8] sm:$0xff]  ;;  %s1709_s15 = smov 112   ;;  %s1710_s23 = smov 104   ;;  %vm446_vm2 = vcmask 1047556  }
  0x32   : > { %426 = vmatpush.msra.mxu1 %v405_v1  ;;  %v403_v5 = vld [vmem:[#allocation6 + $0x8] sm:$0xff]  ;;  %v365_v6 = vld [vmem:[#allocation8] sm:$0xff]  ;;  %v364_v8 = vld [vmem:[%s313_s13] sm:$0xff]  ;;  %s1711_s16 = smov 120   ;;  %v1712_v16 = vmov 1983009808  }
  0x33   : > { %390 = vmatpush.msra.mxu0 %v367_v2  ;;  %v402_v7 = vld [vmem:[#allocation6] sm:$0xff]  ;;  %v1473_v9 = vld [vmem:[%s2131_s4] ss:$0 sm:$0xff]  ;;  %v451_v17 = vunpack.c.l.s4 %v1712_v16  ;;  %s1713_s30 = smov 96   ;;  %v1714_v33 = vmov 1934713408  }
  0x34   : > { %427 = vmatpush.msra.mxu1 %v404_v3  ;;  %v1474_v10 = vld [vmem:[%s2129_s2] ss:$0 sm:$0xff]  ;;  %v475_v34 = vunpack.c.l.s4 %v1714_v33  ;;  %vm798_vm3 = vcmask 64512   ;;  %s1715_s19 = smov 24   ;;  %s1716_s11 = smov 16   ;;  %vm1162_vm4 = vcmask 130048  }
  0x35   : > { %391 = vmatpush.msra.mxu0 %v366_v4  ;;  %v1897_v21 = vunpack.c.0.s8 %v451_v17  ;;  %s1717_s17 = smov 8   ;;  %vm1164_vm5 = vcmask 195584   ;;  %s1356_s9 = sshll.u32 %s1694_s27, 3 }
  0x36   : > { %428 = vmatpush.msra.mxu1 %v403_v5  ;;  %v1907_v40 = vunpack.c.0.s8 %v475_v34  ;;  %s1210_s8 = scalar_lea.hbm %s2134_s7, %s1356_s9  ;;  %s1199_s27 = scalar_lea.sflag [#allocation5], %s1871_s3 }
  0x37   : > { %392 = vmatpush.msra.mxu0 %v365_v6 }
  0x38   : > { %429 = vmatpush.msra.mxu1 %v402_v7  ;;  %1340 = vmatmul.msk.f32.vlgmr.msra.gmra.mxu0 %vm373_vm0, %v364_v8 }
  0x39   : > { %1341 = vmatmul.msk.f32.vlgmr.msra.gmra.mxu1 %vm373_vm0, %v364_v8 }
  0xb5   : > { %v394_v11 = vpop.f32.mrf.mxu0 }
  0xb6   : > { %v431_v12 = vpop.f32.mrf.mxu1  ;;  %v395_v13 = vadd.f32 %v1473_v9, %v394_v11 }
  0xb7   : > { %v432_v14 = vadd.f32 %v1474_v10, %v431_v12 }
  0xb8   : > { %398 = vst.msk [vmem:[#allocation2] sm:$0xff] %vm397_vm1, %v395_v13 }
  0xb9   : > { %439 = vrot.lane.b32.xlu2 %v432_v14, %s1709_s15  ;;  %v448_v19 = vrot.slane %v432_v14, 4 }
  0xbf   : > { %v434_v15 = vld [vmem:[#allocation2] sm:$0xff] }
  0xc0   : > { %563 = vrot.lane.b32.xlu1 %v434_v15, %s1710_s23  ;;  %557 = vrot.lane.b32.xlu0 %v434_v15, %s1711_s16  ;;  %v568_v43 = vrot.slane %v434_v15, 4 }
  0xc1   : > { %442 = vrot.lane.b32.xlu2 %v432_v14, %s1710_s23 }
  0xc8   : > { %436 = vrot.lane.b32.xlu1 %v432_v14, %s1711_s16  ;;  %560 = vrot.lane.b32.xlu0 %v434_v15, %s1709_s15  ;;  %s359_s15 = scalar_lea.vmem [#allocation11], %s1335_s10  ;;  %s1214_s16 = sshll.u32 %s1210_s8, 4  ;;  %s1215_s16 = int_to_ptr.hbm [resolvable:$true] %s1214_s16 }
  0xc9   : > { %s1212_s23 = sshll.u32 %s359_s15, 4  ;;  %s1632_s10 = scalar_lea.hbm %s2134_s7, 16  ;;  %s1213_s23 = int_to_ptr.vmem [resolvable:$true] %s1212_s23 }
 0x113   : > { %v440_v18 = vpop.permute.xlu2 %439 }
 0x114   : > { %v445_v20 = vrot.slane %v440_v18, 4  ;;  %v449_v22 = vsel %vm446_vm2, %v440_v18, %v448_v19 }
 0x115   : > { %v457_v30 = vperm.slane %v449_v22, %v1897_v21 }
 0x116   : > { %v447_v28 = vsel %vm446_vm2, %v445_v20, %v432_v14 }
 0x117   : > { %v453_v35 = vperm.slane %v447_v28, %v1897_v21  ;;  %v484_v39 = vrot.slane %v457_v30, 4 }
 0x119   : > { %v472_v48 = vrot.slane %v453_v35, 4 }
 0x11b   : > { %v443_v31 = vpop.permute.xlu2 %442 }
 0x11c   : > { %v458_v37 = vrot.slane %v443_v31, 4 }
 0x132   : > { %v564_v23 = vpop.permute.xlu1 %563  ;;  %v558_v24 = vpop.permute.xlu0 %557 }
 0x133   : > { %v578_v25 = vrot.slane %v564_v23, 4  ;;  %v580_v26 = vrot.slane %v558_v24, 4  ;;  %v1463_v27 = vpack.i.bf16 %v558_v24, %v434_v15 }
 0x135   : > { %v579_v29 = vsel %vm446_vm2, %v578_v25, %v558_v24  ;;  %1464 = vrot.lane.b32.xlu0 %v1463_v27, %s1713_s30  ;;  %v581_v32 = vsel %vm446_vm2, %v564_v23, %v580_v26 }
 0x136   : > { %v585_v36 = vperm.slane %v579_v29, %v1897_v21  ;;  %v589_v38 = vperm.slane %v581_v32, %v1897_v21 }
 0x138   : > { %v590_v49 = vrot.slane %v585_v36, 4  ;;  %v602_v52 = vrot.slane %v589_v38, 4 }
 0x13a   : > { %v437_v41 = vpop.permute.xlu1 %436  ;;  %v561_v42 = vpop.permute.xlu0 %560 }
 0x13b   : > { %v459_v44 = vsel %vm446_vm2, %v458_v37, %v437_v41  ;;  %v460_v45 = vrot.slane %v437_v41, 4  ;;  %v566_v46 = vrot.slane %v561_v42, 4  ;;  %v1468_v47 = vpack.i.bf16 %v564_v23, %v561_v42 }
 0x13c   : > { %v465_v50 = vperm.slane %v459_v44, %v1897_v21  ;;  %v569_v51 = vsel %vm446_vm2, %v561_v42, %v568_v43 }
 0x13d   : > { %v461_v53 = vsel %vm446_vm2, %v443_v31, %v460_v45  ;;  %v567_v54 = vsel %vm446_vm2, %v566_v46, %v434_v15  ;;  %v577_v55 = vperm.slane %v569_v51, %v1897_v21  ;;  %1469 = vrot.lane.b32.xlu1 %v1468_v47, %s1713_s30  ;;  %s1626_s30 = sshra.s32 %s1215_s16, 4  ;;  %s1627_s30 = int_to_ptr.hbm [resolvable:$true] %s1626_s30 }
 0x13e   : > { %v469_v56 = vperm.slane %v461_v53, %v1897_v21  ;;  %v470_v57 = vrot.slane %v465_v50, 4  ;;  %v473_v58 = vsel %vm446_vm2, %v465_v50, %v472_v48  ;;  %v573_v59 = vperm.slane %v567_v54, %v1897_v21  ;;  %p1633_p10 = scmp.lt.s32.totalorder %s1627_s30, %s2134_s7 }
 0x13f   : > { %v481_v60 = vperm.slane %v473_v58, %v1907_v40  ;;  %v603_v61 = vsel %vm446_vm2, %v602_v52, %v577_v55  ;;  %v604_v62 = vrot.slane %v577_v55, 4 }
 0x140   : > { %v471_v63 = vsel %vm446_vm2, %v470_v57, %v453_v35  ;;  %v482_v0 = vrot.slane %v469_v56, 4  ;;  %v485_v1 = vsel %vm446_vm2, %v469_v56, %v484_v39  ;;  %v591_v2 = vsel %vm446_vm2, %v590_v49, %v573_v59 }
 0x141   : > { %v477_v3 = vperm.slane %v471_v63, %v1907_v40  ;;  %v493_v4 = vperm.slane %v485_v1, %v1907_v40  ;;  %v496_v5 = vrot.slane %v481_v60, 4  ;;  %v592_v6 = vrot.slane %v573_v59, 4 }
 0x142   : > { %v483_v7 = vsel %vm446_vm2, %v482_v0, %v457_v30  ;;  %v597_v8 = vperm.slane %v591_v2, %v1907_v40  ;;  %v605_v9 = vsel %vm446_vm2, %v589_v38, %v604_v62  ;;  %v609_v10 = vperm.slane %v603_v61, %v1907_v40 }
 0x143   : > { %v489_v11 = vperm.slane %v483_v7, %v1907_v40  ;;  %v494_v12 = vrot.slane %v477_v3, 4  ;;  %v497_v13 = vsel %vm446_vm2, 0.0, %v496_v5  ;;  %v500_v14 = vrot.slane %v493_v4, 4 }
 0x144   : > { %v507_v15 = vrot.slane %v497_v13, 4  ;;  %v593_v16 = vsel %vm446_vm2, %v585_v36, %v592_v6  ;;  %v613_v17 = vperm.slane %v605_v9, %v1907_v40  ;;  %v618_v22 = vrot.slane %v609_v10, 4 }
 0x145   : > { %v495_v18 = vsel %vm446_vm2, 0.0, %v494_v12  ;;  %v498_v19 = vrot.slane %v489_v11, 4  ;;  %v501_v20 = vsel %vm446_vm2, 0.0, %v500_v14  ;;  %v601_v25 = vperm.slane %v593_v16, %v1907_v40 }
 0x146   : > { %v518_v23 = vrot.slane %v501_v20, 4  ;;  %v620_v24 = vrot.slane %v613_v17, 4  ;;  %v614_v27 = vrot.slane %v597_v8, 4  ;;  %v508_v28 = vsel %vm446_vm2, %v507_v15, %v495_v18 }
 0x147   : > { %v499_v26 = vsel %vm446_vm2, 0.0, %v498_v19  ;;  %v619_v29 = vsel %vm446_vm2, 0.0, %v618_v22  ;;  %v616_v31 = vrot.slane %v601_v25, 4  ;;  %v502_v35 = vsel %vm446_vm2, %v496_v5, %v477_v3 }
 0x148   : > { %v621_v30 = vsel %vm446_vm2, 0.0, %v620_v24  ;;  %v633_v32 = vsel %vm446_vm2, %v620_v24, %v609_v10  ;;  %v512_v36 = vperm.slane %v508_v28, %v1897_v21  ;;  %v513_v39 = vsel %vm446_vm2, %v500_v14, %v489_v11 }
 0x149   : > { %v638_v33 = vrot.slane %v621_v30, 4  ;;  %v637_v34 = vperm.slane %v633_v32, %v1897_v21  ;;  %v617_v37 = vsel %vm446_vm2, 0.0, %v616_v31  ;;  %v622_v38 = vsel %vm446_vm2, %v616_v31, %v597_v8 }
 0x14a   : > { %v519_v41 = vsel %vm446_vm2, %v518_v23, %v499_v26  ;;  %v626_v42 = vperm.slane %v622_v38, %v1897_v21  ;;  %v627_v43 = vrot.slane %v617_v37, 4  ;;  %v615_v46 = vsel %vm446_vm2, 0.0, %v614_v27 }
 0x14b   : > { %v639_v44 = vsel %vm446_vm2, %v638_v33, %v619_v29  ;;  %v658_v45 = vrot.slane %v637_v34, 4  ;;  %v523_v48 = vperm.slane %v519_v41, %v1897_v21  ;;  %v524_v49 = vrot.slane %v512_v36, 4 }
 0x14c   : > { %v643_v47 = vperm.slane %v639_v44, %v1897_v21  ;;  %v628_v50 = vsel %vm446_vm2, %v627_v43, %v615_v46  ;;  %v646_v51 = vrot.slane %v626_v42, 4  ;;  %v506_v52 = vperm.slane %v502_v35, %v1897_v21 }
 0x14d   : > { %v517_v53 = vperm.slane %v513_v39, %v1897_v21  ;;  %v632_v54 = vperm.slane %v628_v50, %v1897_v21  ;;  %v536_v59 = vrot.slane %v523_v48, 4 }
 0x14e   : > { %v656_v55 = vrot.slane %v643_v47, 4  ;;  %v659_v56 = vsel %vm446_vm2, %v643_v47, %v658_v45  ;;  %v525_v58 = vsel %vm446_vm2, %v524_v49, %v506_v52  ;;  %v526_v9 = vrot.slane %v506_v52, 4 }
 0x14f   : > { %v667_v57 = vperm.slane %v659_v56, %v1907_v40  ;;  %v644_v60 = vrot.slane %v632_v54, 4  ;;  %v647_v62 = vsel %vm446_vm2, %v632_v54, %v646_v51  ;;  %v537_v1 = vsel %vm446_vm2, %v536_v59, %v517_v53 }
 0x150   : > { %v657_v61 = vsel %vm446_vm2, %v656_v55, %v637_v34  ;;  %v655_v0 = vperm.slane %v647_v62, %v1907_v40  ;;  %v538_v2 = vrot.slane %v517_v53, 4  ;;  %v531_v5 = vperm.slane %v525_v58, %v1907_v40 }
 0x151   : > { %v663_v63 = vperm.slane %v657_v61, %v1907_v40  ;;  %v645_v3 = vsel %vm446_vm2, %v644_v60, %v626_v42  ;;  %v672_v4 = vrot.slane %v667_v57, 4  ;;  %v543_v6 = vperm.slane %v537_v1, %v1907_v40 }
 0x152   : > { %v651_v7 = vperm.slane %v645_v3, %v1907_v40  ;;  %v674_v11 = vrot.slane %v655_v0, 4  ;;  %v539_v14 = vsel %vm446_vm2, %v523_v48, %v538_v2  ;;  %v550_v16 = vrot.slane %v531_v5, 4 }
 0x153   : > { %v668_v8 = vrot.slane %v663_v63, 4  ;;  %v548_v10 = vrot.slane %v543_v6, 4  ;;  %v673_v15 = vsel %vm446_vm2, %v672_v4, %v655_v0  ;;  %v527_v18 = vsel %vm446_vm2, %v512_v36, %v526_v9 }
 0x154   : > { %v670_v13 = vrot.slane %v651_v7, 4  ;;  %v675_v20 = vsel %vm446_vm2, %v667_v57, %v674_v11  ;;  %v547_v22 = vperm.slane %v539_v14, %v1907_v40  ;;  %v551_v23 = vsel %vm446_vm2, %v543_v6, %v550_v16 }
 0x155   : > { %v669_v12 = vsel %vm446_vm2, %v668_v8, %v651_v7  ;;  %v549_v19 = vsel %vm446_vm2, %v548_v10, %v531_v5  ;;  %v535_v24 = vperm.slane %v527_v18, %v1907_v40 }
 0x156   : > { %1342 = vmatpush.xpose.msk.msra.mxu2 %vm798_vm3, %v669_v12  ;;  %v671_v17 = vsel %vm446_vm2, %v663_v63, %v670_v13  ;;  %v552_v25 = vrot.slane %v547_v22, 4 }
 0x157   : > { %1344 = vmatpush.xpose.msk.msra.mxu3 %vm798_vm3, %v671_v17  ;;  %v554_v26 = vrot.slane %v535_v24, 4 }
 0x158   : > { %v553_v27 = vsel %vm446_vm2, %v552_v25, %v535_v24 }
 0x159   : > { %1343 = vmatmul.msk.f32.vlgmr.msra.gmra.mxu2 %vm798_vm3, %v549_v19  ;;  %v555_v28 = vsel %vm446_vm2, %v547_v22, %v554_v26 }
 0x15a   : > { %1346 = vmatpush.xpose.msk.msrb.mxu2 %vm798_vm3, %v673_v15  ;;  %1345 = vmatmul.msk.f32.vlgmr.msra.gmra.mxu3 %vm798_vm3, %v551_v23 }
 0x15b   : > { %1348 = vmatpush.xpose.msk.msrb.mxu3 %vm798_vm3, %v675_v20 }
 0x161   : > { %1347 = vmatmul.msk.f32.vlgmr.msrb.gmra.mxu2 %vm798_vm3, %v553_v27 }
 0x162   : > { %1349 = vmatmul.msk.f32.vlgmr.msrb.gmra.mxu3 %vm798_vm3, %v555_v28 }
 0x1a7   : > { %v1465_v29 = vpop.permute.xlu0 %1464 }
 0x1a8   : > { %v1467_v30 = vunpack.i.h.bf16 %v1465_v29  ;;  %v1466_v31 = vunpack.i.l.bf16 %v1465_v29 }
 0x1aa   : > { %v702_v33 = vrot.slane %v1467_v30, 4  ;;  %v690_v34 = vrot.slane %v1466_v31, 4 }
 0x1af   : > { %v1470_v32 = vpop.permute.xlu1 %1469 }
 0x1b0   : > { %v1472_v35 = vunpack.i.h.bf16 %v1470_v32  ;;  %v1471_v36 = vunpack.i.l.bf16 %v1470_v32 }
 0x1b2   : > { %v700_v37 = vrot.slane %v1472_v35, 4  ;;  %v688_v38 = vrot.slane %v1471_v36, 4  ;;  %v691_v39 = vsel %vm446_vm2, %v1471_v36, %v690_v34  ;;  %v703_v41 = vsel %vm446_vm2, %v1472_v35, %v702_v33 }
 0x1b3   : > { %v699_v42 = vperm.slane %v691_v39, %v1897_v21  ;;  %v711_v43 = vperm.slane %v703_v41, %v1897_v21 }
 0x1b4   : > { %v689_v44 = vsel %vm446_vm2, %v688_v38, %v1466_v31  ;;  %v701_v45 = vsel %vm446_vm2, %v700_v37, %v1467_v30 }
 0x1b5   : > { %v695_v46 = vperm.slane %v689_v44, %v1897_v21  ;;  %v707_v47 = vperm.slane %v701_v45, %v1897_v21  ;;  %v724_v48 = vrot.slane %v711_v43, 4  ;;  %v726_v49 = vrot.slane %v699_v42, 4 }
 0x1b7   : > { %v712_v50 = vrot.slane %v707_v47, 4  ;;  %v714_v51 = vrot.slane %v695_v46, 4  ;;  %v725_v52 = vsel %vm446_vm2, %v724_v48, %v699_v42  ;;  %v727_v53 = vsel %vm446_vm2, %v711_v43, %v726_v49 }
 0x1b8   : > { %v731_v54 = vperm.slane %v725_v52, %v1907_v40  ;;  %v735_v55 = vperm.slane %v727_v53, %v1907_v40 }
 0x1b9   : > { %v713_v56 = vsel %vm446_vm2, %v712_v50, %v695_v46  ;;  %v715_v57 = vsel %vm446_vm2, %v707_v47, %v714_v51 }
 0x1ba   : > { %v719_v58 = vperm.slane %v713_v56, %v1907_v40  ;;  %v723_v59 = vperm.slane %v715_v57, %v1907_v40  ;;  %v740_v60 = vrot.slane %v731_v54, 4  ;;  %v742_v61 = vrot.slane %v735_v55, 4 }
 0x1bc   : > { %v736_v62 = vrot.slane %v719_v58, 4  ;;  %v738_v63 = vrot.slane %v723_v59, 4  ;;  %v743_v0 = vsel %vm446_vm2, 0.0, %v742_v61  ;;  %v755_v1 = vsel %vm446_vm2, %v742_v61, %v731_v54 }
 0x1bd   : > { %v760_v2 = vrot.slane %v743_v0, 4  ;;  %v741_v4 = vsel %vm446_vm2, 0.0, %v740_v60  ;;  %v759_v6 = vperm.slane %v755_v1, %v1897_v21 }
 0x1be   : > { %v739_v3 = vsel %vm446_vm2, 0.0, %v738_v63  ;;  %v744_v5 = vsel %vm446_vm2, %v738_v63, %v719_v58  ;;  %v737_v10 = vsel %vm446_vm2, 0.0, %v736_v62 }
 0x1bf   : > { %v749_v7 = vrot.slane %v739_v3, 4  ;;  %v748_v8 = vperm.slane %v744_v5, %v1897_v21  ;;  %v761_v9 = vsel %vm446_vm2, %v760_v2, %v741_v4  ;;  %v780_v12 = vrot.slane %v759_v6, 4 }
 0x1c0   : > { %v765_v11 = vperm.slane %v761_v9, %v1897_v21 }
 0x1c1   : > { %v750_v13 = vsel %vm446_vm2, %v749_v7, %v737_v10  ;;  %v768_v14 = vrot.slane %v748_v8, 4 }
 0x1c2   : > { %v754_v15 = vperm.slane %v750_v13, %v1897_v21  ;;  %v781_v16 = vsel %vm446_vm2, %v765_v11, %v780_v12  ;;  %v778_v17 = vrot.slane %v765_v11, 4 }
 0x1c3   : > { %v789_v18 = vperm.slane %v781_v16, %v1907_v40 }
 0x1c4   : > { %v769_v19 = vsel %vm446_vm2, %v754_v15, %v768_v14  ;;  %v766_v20 = vrot.slane %v754_v15, 4  ;;  %v779_v22 = vsel %vm446_vm2, %v778_v17, %v759_v6 }
 0x1c5   : > { %v777_v23 = vperm.slane %v769_v19, %v1907_v40  ;;  %v794_v24 = vrot.slane %v789_v18, 4  ;;  %v785_v25 = vperm.slane %v779_v22, %v1907_v40 }
 0x1c6   : > { %v767_v26 = vsel %vm446_vm2, %v766_v20, %v748_v8 }
 0x1c7   : > { %v795_v27 = vsel %vm446_vm2, %v794_v24, %v777_v23  ;;  %v773_v28 = vperm.slane %v767_v26, %v1907_v40  ;;  %v790_v29 = vrot.slane %v785_v25, 4  ;;  %v796_v30 = vrot.slane %v777_v23, 4 }
 0x1c8   : > { %1003 = vmatpush.msra.mxu2 %v795_v27 }
 0x1c9   : > { %v791_v31 = vsel %vm446_vm2, %v790_v29, %v773_v28  ;;  %v797_v32 = vsel %vm446_vm2, %v789_v18, %v796_v30  ;;  %v792_v33 = vrot.slane %v773_v28, 4 }
 0x1ca   : > { %957 = vmatpush.msrb.mxu0 %v791_v31  ;;  %1026 = vmatpush.msra.mxu3 %v797_v32 }
 0x1cb   : > { %v793_v34 = vsel %vm446_vm2, %v785_v25, %v792_v33 }
 0x1cc   : > { %980 = vmatpush.msrb.mxu1 %v793_v34 }
 0x1dc   : > { %v822_v35 = vpop.f32.mrf.mxu2 }
 0x1dd   : > { %v903_v36 = vsel %vm798_vm3, %v822_v35, -inf  ;;  %v848_v37 = vpop.f32.mrf.mxu3 }
 0x1de   : > { %904 = vmax.xlane.f32.xlu1 %v903_v36  ;;  %v906_v43 = vsel %vm798_vm3, %v848_v37, -inf }
 0x1e4   : > { %v874_v38 = vpop.f32.mrf.mxu2 }
 0x1e5   : > { %v909_v39 = vsel %vm798_vm3, %v874_v38, -inf  ;;  %v900_v41 = vpop.f32.mrf.mxu3 }
 0x1e6   : > { %910 = vmax.xlane.f32.xlu2 %v909_v39  ;;  %v912_v42 = vsel %vm798_vm3, %v900_v41, -inf }
 0x1e7   : > { %913 = vmax.xlane.f32.xlu0 %v912_v42 }
 0x1ee   : > { %907 = vmax.xlane.f32.xlu2 %v906_v43 }
 0x251   : > { %v905_v44 = vpop.xlane.xlu1 %904 }
 0x252   : > { %v915_v45 = vsub.f32 %v822_v35, %v905_v44 }
 0x254   : > { %v919_v46 = vmul.f32 1.442695, %v915_v45 }
 0x256   : > { %1476 = vpow2.f32 %v919_v46 }
 0x259   : > { %v911_v47 = vpop.xlane.xlu2 %910 }
 0x25a   : > { %v917_v48 = vsub.f32 %v874_v38, %v911_v47  ;;  %v914_v49 = vpop.xlane.xlu0 %913 }
 0x25b   : > { %v918_v52 = vsub.f32 %v900_v41, %v914_v49 }
 0x25c   : > { %v1477_v50 = vpop.eup %1476  ;;  %v923_v51 = vmul.f32 1.442695, %v917_v48 }
 0x25d   : > { %1350 = vmatmul.msk.f32.vlgmr.msrb.gmra.mxu0 %vm798_vm3, %v1477_v50  ;;  %v927_v53 = vsel %vm798_vm3, %v1477_v50, 0.0  ;;  %v925_v54 = vmul.f32 1.442695, %v918_v52 }
 0x25e   : > { %1478 = vpow2.f32 %v923_v51  ;;  %928 = vadd.xlane.f32.xlu0 %v927_v53 }
 0x25f   : > { %1480 = vpow2.f32 %v925_v54 }
 0x261   : > { %v908_v55 = vpop.xlane.xlu2 %907 }
 0x262   : > { %v916_v56 = vsub.f32 %v848_v37, %v908_v55 }
 0x264   : > { %v1479_v57 = vpop.eup %1478  ;;  %v921_v58 = vmul.f32 1.442695, %v916_v56 }
 0x265   : > { %1352 = vmatmul.msk.f32.vlgmr.msra.gmra.mxu2 %vm798_vm3, %v1479_v57  ;;  %v933_v59 = vsel %vm798_vm3, %v1479_v57, 0.0  ;;  %v1481_v60 = vpop.eup %1480 }
 0x266   : > { %1482 = vpow2.f32 %v921_v58  ;;  %934 = vadd.xlane.f32.xlu2 %v933_v59  ;;  %1353 = vmatmul.msk.f32.vlgmr.msra.gmra.mxu3 %vm798_vm3, %v1481_v60  ;;  %v936_v61 = vsel %vm798_vm3, %v1481_v60, 0.0 }
 0x267   : > { %937 = vadd.xlane.f32.xlu1 %v936_v61 }
 0x26c   : > { %v1483_v62 = vpop.eup %1482 }
 0x26d   : > { %1351 = vmatmul.msk.f32.vlgmr.msrb.gmra.mxu1 %vm798_vm3, %v1483_v62  ;;  %v930_v63 = vsel %vm798_vm3, %v1483_v62, 0.0 }
 0x26e   : > { %931 = vadd.xlane.f32.xlu2 %v930_v63 }
 0x2d1   : > { %v929_v1 = vpop.xlane.xlu0 %928 }
 0x2d2   : > { %1484 = vrcp.f32 %v929_v1 }
 0x2d8   : > { %v1485_v5 = vpop.eup %1484 }
 0x2d9   : > { %v935_v0 = vpop.xlane.xlu2 %934 }
 0x2da   : > { %v938_v2 = vpop.xlane.xlu1 %937  ;;  %1486 = vrcp.f32 %v935_v0  ;;  %v959_v4 = vpop.f32.mrf.mxu0 }
 0x2db   : > { %1488 = vrcp.f32 %v938_v2  ;;  %v1035_v6 = vmul.f32 %v1485_v5, %v959_v4 }
 0x2dd   : > { %v1041_v10 = vrot.slane %v1035_v6, 4 }
 0x2e0   : > { %v1487_v7 = vpop.eup %1486 }
 0x2e1   : > { %v932_v3 = vpop.xlane.xlu2 %931  ;;  %v1489_v9 = vpop.eup %1488 }
 0x2e2   : > { %1490 = vrcp.f32 %v932_v3 }
 0x2e8   : > { %v1005_v8 = vpop.f32.mrf.mxu2  ;;  %v1491_v12 = vpop.eup %1490 }
 0x2e9   : > { %v1037_v11 = vmul.f32 %v1487_v7, %v1005_v8  ;;  %v1028_v14 = vpop.f32.mrf.mxu3 }
 0x2ea   : > { %v982_v13 = vpop.f32.mrf.mxu1  ;;  %v1038_v18 = vmul.f32 %v1489_v9, %v1028_v14 }
 0x2eb   : > { %v1039_v15 = vrot.slane %v1037_v11, 4  ;;  %v1042_v16 = vsel %vm446_vm2, %v1037_v11, %v1041_v10  ;;  %v1036_v17 = vmul.f32 %v1491_v12, %v982_v13 }
 0x2ec   : > { %v1050_v19 = vperm.slane %v1042_v16, %v1897_v21  ;;  %v1051_v23 = vrot.slane %v1038_v18, 4  ;;  %v1168_v16 = vld [vmem:[#allocation9 + $0x10] sm:$0xff] }
 0x2ed   : > { %v1040_v20 = vsel %vm446_vm2, %v1039_v15, %v1035_v6  ;;  %v1053_v22 = vrot.slane %v1036_v17, 4  ;;  %v1169_v15 = vld [vmem:[#allocation9 + $0x18] sm:$0xff] }
 0x2ee   : > { %v1046_v24 = vperm.slane %v1040_v20, %v1897_v21  ;;  %v1052_v25 = vsel %vm446_vm2, %v1051_v23, %v1036_v17  ;;  %v1077_v28 = vrot.slane %v1050_v19, 4  ;;  %1189 = vmatpush.msra.mxu0 %v1169_v15  ;;  %v1166_v17 = vld [vmem:[#allocation9] sm:$0xff] }
 0x2ef   : > { %v1054_v26 = vsel %vm446_vm2, %v1038_v18, %v1053_v22  ;;  %v1058_v29 = vperm.slane %v1052_v25, %v1897_v21  ;;  %v1475_v25 = vld [vmem:[%s2133_s6] ss:$0 sm:$0xff] }
 0x2f0   : > { %v1065_v27 = vrot.slane %v1046_v24, 4  ;;  %v1062_v30 = vperm.slane %v1054_v26, %v1897_v21  ;;  %1190 = vmatpush.msra.mxu0 %v1168_v16 }
 0x2f1   : > { %v1063_v31 = vrot.slane %v1058_v29, 4 }
 0x2f2   : > { %v1066_v32 = vsel %vm446_vm2, %v1058_v29, %v1065_v27  ;;  %v1075_v33 = vrot.slane %v1062_v30, 4  ;;  %v1078_v34 = vsel %vm446_vm2, %v1062_v30, %v1077_v28 }
 0x2f3   : > { %v1074_v35 = vperm.slane %v1066_v32, %v1907_v40  ;;  %v1086_v36 = vperm.slane %v1078_v34, %v1907_v40  ;;  %v1064_v37 = vsel %vm446_vm2, %v1063_v31, %v1046_v24 }
 0x2f4   : > { %v1076_v38 = vsel %vm446_vm2, %v1075_v33, %v1050_v19  ;;  %v1070_v39 = vperm.slane %v1064_v37, %v1907_v40 }
 0x2f5   : > { %v1082_v41 = vperm.slane %v1076_v38, %v1907_v40  ;;  %v1089_v42 = vrot.slane %v1074_v35, 4  ;;  %v1093_v43 = vrot.slane %v1086_v36, 4 }
 0x2f6   : > { %v1087_v44 = vrot.slane %v1070_v39, 4 }
 0x2f7   : > { %v1090_v45 = vsel %vm446_vm2, 0.0, %v1089_v42  ;;  %v1091_v46 = vrot.slane %v1082_v41, 4  ;;  %v1094_v47 = vsel %vm446_vm2, 0.0, %v1093_v43  ;;  %v1095_v50 = vsel %vm446_vm2, %v1089_v42, %v1070_v39 }
 0x2f8   : > { %v1100_v48 = vrot.slane %v1090_v45, 4  ;;  %v1111_v49 = vrot.slane %v1094_v47, 4  ;;  %v1106_v51 = vsel %vm446_vm2, %v1093_v43, %v1082_v41  ;;  %v1088_v52 = vsel %vm446_vm2, 0.0, %v1087_v44 }
 0x2f9   : > { %v1092_v53 = vsel %vm446_vm2, 0.0, %v1091_v46  ;;  %v1099_v54 = vperm.slane %v1095_v50, %v1897_v21  ;;  %v1110_v55 = vperm.slane %v1106_v51, %v1897_v21 }
 0x2fa   : > { %v1101_v56 = vsel %vm446_vm2, %v1100_v48, %v1088_v52  ;;  %v1112_v57 = vsel %vm446_vm2, %v1111_v49, %v1092_v53 }
 0x2fb   : > { %v1105_v58 = vperm.slane %v1101_v56, %v1897_v21  ;;  %v1116_v59 = vperm.slane %v1112_v57, %v1897_v21  ;;  %v1119_v60 = vrot.slane %v1099_v54, 4  ;;  %v1131_v61 = vrot.slane %v1110_v55, 4 }
 0x2fd   : > { %v1120_v62 = vsel %vm446_vm2, %v1105_v58, %v1119_v60  ;;  %v1132_v63 = vsel %vm446_vm2, %v1116_v59, %v1131_v61  ;;  %v1117_v0 = vrot.slane %v1105_v58, 4  ;;  %v1129_v1 = vrot.slane %v1116_v59, 4 }
 0x2fe   : > { %v1128_v2 = vperm.slane %v1120_v62, %v1907_v40  ;;  %v1140_v3 = vperm.slane %v1132_v63, %v1907_v40 }
 0x2ff   : > { %v1118_v4 = vsel %vm446_vm2, %v1117_v0, %v1099_v54  ;;  %v1130_v5 = vsel %vm446_vm2, %v1129_v1, %v1110_v55 }
 0x300   : > { %v1147_v6 = vrot.slane %v1128_v2, 4  ;;  %v1145_v7 = vrot.slane %v1140_v3, 4  ;;  %v1124_v21 = vperm.slane %v1118_v4, %v1907_v40  ;;  %v1136_v8 = vperm.slane %v1130_v5, %v1907_v40  ;;  %v1167_v40 = vld [vmem:[#allocation9 + $0x8] sm:$0xff] }
 0x301   : > { %1191 = vmatpush.msra.mxu0 %v1167_v40 }
 0x302   : > { %v1148_v9 = vsel %vm446_vm2, %v1140_v3, %v1147_v6  ;;  %v1146_v10 = vsel %vm446_vm2, %v1145_v7, %v1128_v2  ;;  %v1141_v11 = vrot.slane %v1136_v8, 4  ;;  %v1143_v12 = vrot.slane %v1124_v21, 4 }
 0x303   : > { %1158 = vrot.lane.b32.xlu2 %v1148_v9, %s1715_s19  ;;  %1154 = vrot.lane.b32.xlu1 %v1146_v10, %s1716_s11  ;;  %s1628_s19 = scalar_lea.hbm %s1627_s30, 8 }
 0x304   : > { %v1144_v13 = vsel %vm446_vm2, %v1136_v8, %v1143_v12  ;;  %v1142_v14 = vsel %vm446_vm2, %v1141_v11, %v1124_v21  ;;  %1192 = vmatpush.msra.mxu0 %v1166_v17  ;;  %p1629_p1 = scmp.ne.s32.totalorder %s1627_s30, %s1628_s19  ;;  %p1634_p11 = scmp.lt.s32.totalorder %s1632_s10, %s1628_s19 }
 0x305   : > { %1150 = vrot.lane.b32.xlu0 %v1144_v13, %s1717_s17 }
 0x306   : > { %p1630_p3 = pnand %p1629_p1, %p1849_p4  ;;  %p1635_p12 = por %p1634_p11, %p1633_p10 }
 0x308   : > { %p1631_p9 = pneg %p1630_p3 }
 0x30a   : > { %p1636_p13 = pnand %p1635_p12, %p1631_p9 }
 0x35d   : > { %v1159_v22 = vpop.permute.xlu2 %1158 }
 0x375   : > { %v1155_v19 = vpop.permute.xlu1 %1154 }
 0x377   : > { %v1151_v18 = vpop.permute.xlu0 %1150 }
 0x378   : > { %v1161_v20 = vsel %vm798_vm3, %v1142_v14, %v1151_v18 }
 0x379   : > { %v1163_v23 = vsel %vm1162_vm4, %v1161_v20, %v1155_v19 }
 0x37a   : > { %v1165_v24 = vsel %vm1164_vm5, %v1163_v23, %v1159_v22 }
 0x37b   : > { %1354 = vmatmul.msk.f32.vlgmr.msra.gmra.mxu0 %vm373_vm0, %v1165_v24 }
 0x3f8   : > { %v1194_v26 = vpop.f32.mrf.mxu0 }
 0x3f9   : > { %v1195_v27 = vadd.f32 %v1475_v25, %v1194_v26 }
 0x3fb   : > { %1197 = vst.msk [vmem:[%s359_s15] sm:$0xff] %vm373_vm0, %v1195_v27 }
 0x3fc   : > { %1639 = shalt.err (!%p1636_p13)
}
 0x3fd   : > { %1373 = dma.vmem_to_hbm [thread:$0]  (%p1849_p4), %s1213_s23, 128, %s1215_s16, %s1199_s27  }
 0x3fe PF: > { %s1226_s3 = sand.u32 1, %s1682_s24   ;;  %p1390_p0 = pnand %p1331_p6, %p1857_p7 }
 0x3ff   : > { %s1227_s1 = scalar_lea.sflag [#allocation5], %s1226_s3 }
 0x400   : > { %p1391_p2 = pneg %p1390_p0 }
 0x402   : > { %1677 = dma.done.wait (%p1391_p2), %s1227_s1, 128  }
 0x403   : > { %1679 = vsyncadd (%p1391_p2), %s1227_s1, 4294967168  ;;  %s25_s29 = sadd.s32 1, %s1702_s29   ;;  %s2146_s24 = smov %s1686_s25 }
 0x404   : > { %p22_p5 = scmp.ge.s32.totalorder %s25_s29, 4   ;;  %s2147_s25 = smov %s1690_s26 }
 0x405   : > { %s2148_s26 = smov %s1855_s21  ;;  %s2149_s27 = smov %s1698_s28 }
 0x406   : > { %s2150_s28 = smov %s2152_s14  ;;  %24 = sbr.rel (!%p22_p5) target bundleno = 11 (0xb), region = 110 }
 0x40b   :  { %1233 = vsyncpa [#allocation4], 1 }
 0x40c   :  { %1235 = vsyncpa [#allocation4 + $0x1], 1 }
 0x40d   :  { %1236 = vsyncpa [#allocation7], 1 }
 0x40e   :  { %1237 = vsyncpa [#allocation10], 1 }
 0x40f   :  { %1238 = vsyncpa [#allocation5], 1 }
 0x410   :  { %1240 = vsyncpa [#allocation5 + $0x1], 1 }

</bundles_post_ra>
